<compile_context>
chip_gen: v7x
topology: tpu7x:2x2x1
jax: 0.10.0
libtpu: 0.0.40
codegen_flags: <defaults>
</compile_context>

<pallas_src>
import functools

import numpy as np
import jax
import jax.numpy as jnp
from jax import lax
from jax.experimental import pallas as pl
from jax.experimental.pallas import tpu as pltpu


def _round_up(x, m):
    return -(-x // m) * m


@functools.lru_cache(maxsize=None)
def _has_megacore():
    """True only on chips with 2 TensorCores per chip (v7x)."""
    try:
        kind = jax.devices()[0].device_kind.lower()
    except Exception:
        return False
    return "v7" in kind


def _fold_sq(x_ref, full_chunks, partial_lanes):
    """Sum of x^2 over the first full_chunks*128 + partial_lanes lanes of x_ref,
    folded onto a (rows, 128) f32 lane-partial with pure VPU ops.

    Each 128-lane chunk is loaded, cast, (masked,) squared and accumulated
    immediately — the full tile is never materialized in f32.
    """
    part = None
    for j in range(full_chunks):
        c = x_ref[:, j * 128:(j + 1) * 128].astype(jnp.float32)
        sq = c * c
        part = sq if part is None else part + sq
    if partial_lanes:
        j = full_chunks
        c = x_ref[:, j * 128:(j + 1) * 128].astype(jnp.float32)
        lane = lax.broadcasted_iota(jnp.int32, c.shape, 1)
        c = jnp.where(lane < partial_lanes, c, 0.0)   # mask before squaring (kills NaN/Inf garbage)
        sq = c * c
        part = sq if part is None else part + sq
    if part is None:  # unreachable (every block has >= 1 valid lane), shape-safe fallback
        part = jnp.zeros((x_ref.shape[0], 128), jnp.float32)
    return part


def _reduce_l2_kernel(x_ref, o_ref, acc_ref, *, n_chunks, last_full,
                      last_partial, grid_k, apply_sqrt):
    """Row-wise sum-of-squares over the K grid axis with a resident (tm,128)
    lane-partial accumulator; cross-lane reduce + sqrt once per output block."""
    k = pl.program_id(1)

    @pl.when(k == 0)
    def _():
        acc_ref[...] = jnp.zeros_like(acc_ref)

    tail_same = (last_full == n_chunks) and (last_partial == 0)

    if tail_same:
        acc_ref[...] += _fold_sq(x_ref, n_chunks, 0)
    elif grid_k == 1:
        acc_ref[...] += _fold_sq(x_ref, last_full, last_partial)
    else:
        @pl.when(k < grid_k - 1)        # hot path: full blocks, no masking at all
        def _():
            acc_ref[...] += _fold_sq(x_ref, n_chunks, 0)

        @pl.when(k == grid_k - 1)       # only the last K block pays the mask
        def _():
            acc_ref[...] += _fold_sq(x_ref, last_full, last_partial)

    @pl.when(k == grid_k - 1)
    def _():
        s = jnp.sum(acc_ref[...], axis=-1, keepdims=True)  # one XLU reduce / block
        if apply_sqrt:
            s = jnp.sqrt(s)
        o_ref[...] = s.astype(o_ref.dtype)


def _reduce_l2_lanes_kernel(x_ref, o_ref, *, n_chunks, last_full, last_partial,
                            grid_k):
    """Per-(i,k)-block (rows, 128) lane-partial sums of squares.  No cross-k
    state, so the K grid axis is 'parallel' (both v7x TensorCores busy)."""
    k = pl.program_id(1)
    tail_same = (last_full == n_chunks) and (last_partial == 0)

    if tail_same:
        o_ref[...] = _fold_sq(x_ref, n_chunks, 0)
    elif grid_k == 1:
        o_ref[...] = _fold_sq(x_ref, last_full, last_partial)
    else:
        @pl.when(k < grid_k - 1)
        def _():
            o_ref[...] = _fold_sq(x_ref, n_chunks, 0)

        @pl.when(k == grid_k - 1)
        def _():
            o_ref[...] = _fold_sq(x_ref, last_full, last_partial)


def _pick_tk(K, itemsize):
    tk_cap = 4096 if itemsize >= 4 else 8192
    k_pad = _round_up(K, 128)
    return k_pad if k_pad <= tk_cap else tk_cap


def _vmem_limit(block_bytes):
    # double-buffered input + scratch + margin, clamped to a safe range on all gens
    return int(min(28 << 20, max(16 << 20, block_bytes + (2 << 20))))


def _sum_sq_rows(x2d, *, apply_sqrt, out_dtype):
    """Row-wise sum(x^2) (optionally sqrt'ed) of an unpadded (M, K) array -> (M,)."""
    M, K = x2d.shape
    itemsize = int(np.dtype(x2d.dtype).itemsize)
    out_itemsize = int(np.dtype(out_dtype).itemsize)

    tk = _pick_tk(K, itemsize)
    tm = min(256, _round_up(M, 8))
    # v7x megacore only: give the parallel M axis >= 2 blocks.  On single-TC
    # v5e/v6e the split is pure per-step overhead, so keep the biggest tm.
    if _has_megacore() and M > 8 and pl.cdiv(M, tm) < 2:
        tm = max(8, _round_up(pl.cdiv(M, 2), 8))

    grid_k = pl.cdiv(K, tk)
    grid = (pl.cdiv(M, tm), grid_k)

    n_chunks = tk // 128
    rem = K - (grid_k - 1) * tk          # valid columns in the last K block (>= 1)
    last_full = rem // 128
    last_partial = rem % 128

    kernel = functools.partial(_reduce_l2_kernel, n_chunks=n_chunks,
                               last_full=last_full, last_partial=last_partial,
                               grid_k=grid_k, apply_sqrt=apply_sqrt)

    cost = pl.CostEstimate(
        flops=2 * M * K, transcendentals=0,
        bytes_accessed=M * K * itemsize + M * out_itemsize)

    out = pl.pallas_call(
        kernel,
        out_shape=jax.ShapeDtypeStruct((M, 1), out_dtype),
        grid_spec=pltpu.PrefetchScalarGridSpec(
            num_scalar_prefetch=0,
            grid=grid,
            in_specs=[pl.BlockSpec((tm, tk), lambda i, k: (i, k))],
            out_specs=pl.BlockSpec((tm, 1), lambda i, k: (i, 0)),
            scratch_shapes=[pltpu.VMEM((tm, 128), jnp.float32)],
        ),
        compiler_params=pltpu.CompilerParams(
            dimension_semantics=("parallel", "arbitrary"),
            vmem_limit_bytes=_vmem_limit(2 * tm * tk * itemsize + tm * 128 * 4)),
        cost_estimate=cost,
    )(x2d)
    return out[:, 0]


def _sum_sq_small_m(x2d):
    """(M<8, K) -> (M,) f32 sum of squares via per-K-block lane partials with a
    'parallel' K axis.  No divisibility requirement on K."""
    M, K = x2d.shape
    itemsize = int(np.dtype(x2d.dtype).itemsize)

    tk = _pick_tk(K, itemsize)
    grid_k = pl.cdiv(K, tk)
    n_chunks = tk // 128
    rem = K - (grid_k - 1) * tk
    last_full = rem // 128
    last_partial = rem % 128

    kernel = functools.partial(_reduce_l2_lanes_kernel, n_chunks=n_chunks,
                               last_full=last_full, last_partial=last_partial,
                               grid_k=grid_k)

    cost = pl.CostEstimate(
        flops=2 * M * K, transcendentals=0,
        bytes_accessed=M * K * itemsize + M * grid_k * 128 * 4)

    out = pl.pallas_call(
        kernel,
        out_shape=jax.ShapeDtypeStruct((M, grid_k * 128), jnp.float32),
        grid_spec=pltpu.PrefetchScalarGridSpec(
            num_scalar_prefetch=0,
            grid=(1, grid_k),
            in_specs=[pl.BlockSpec((M, tk), lambda i, k: (i, k))],
            out_specs=pl.BlockSpec((M, 128), lambda i, k: (i, k)),
        ),
        compiler_params=pltpu.CompilerParams(
            dimension_semantics=("parallel", "parallel"),
            vmem_limit_bytes=_vmem_limit(2 * M * tk * itemsize + M * 128 * 4)),
        cost_estimate=cost,
    )(x2d)
    return out.sum(axis=1)            # tiny combine in plain JAX


def _l2_rows(x2d, out_dtype):
    """Row-wise L2 norm of a (M, K) array -> (M,)."""
    M, K = x2d.shape
    if M == 0 or K == 0:
        return jnp.zeros((M,), out_dtype)

    if M < 8 and K >= 256:
        # Fast path 1: fold K onto rows (copy-free reshape of the contiguous
        # (M, K) buffer) so all 8 sublanes + the parallel M axis get used.
        for kc in (4096, 2048, 1024, 512, 256, 128):
            if K % kc == 0 and (M * K) // kc >= 16:
                r = K // kc
                parts = _sum_sq_rows(x2d.reshape(M * r, kc),
                                     apply_sqrt=False, out_dtype=jnp.float32)
                sums = parts.reshape(M, r).sum(axis=1)
                return jnp.sqrt(sums).astype(out_dtype)
        # Fast path 2: K doesn't factor nicely -> per-K-block lane partials with
        # a parallel K grid axis (keeps both v7x TCs busy, no divisibility need).
        if K >= 1024:
            sums = _sum_sq_small_m(x2d)
            return jnp.sqrt(sums).astype(out_dtype)

    return _sum_sq_rows(x2d, apply_sqrt=True, out_dtype=out_dtype)


class ReduceL2:
    """Mirrors onnx2pytorch.operations.reducel2.ReduceL2 forward semantics."""

    def __init__(self, opset_version, dim=None, keepdim=True,
                 noop_with_empty_axes=False):
        self.opset_version = opset_version
        self.dim = dim
        self.keepdim = keepdim
        self.noop_with_empty_axes = noop_with_empty_axes

    def __call__(self, data, axes=None):
        if self.opset_version < 13:
            dims = self.dim
        else:
            dims = axes

        if dims is None:
            if self.noop_with_empty_axes:
                return data
            dims = tuple(range(data.ndim))
        else:
            if isinstance(dims, int):
                dims = (dims,)
            else:
                # TODO(synk): requires concrete (non-traced) axes values.
                dims = tuple(int(d) for d in np.asarray(dims).reshape(-1))
            if len(dims) == 0:
                # ONNX: empty axes list == reduce over all axes (unless noop flag).
                if self.noop_with_empty_axes:
                    return data
                dims = tuple(range(data.ndim))

        dims = tuple(sorted(set(d % data.ndim for d in dims)))
        keep = tuple(i for i in range(data.ndim) if i not in dims)
        perm = keep + dims

        # TODO(synk): middle-axis reductions (non-trailing `dims`) pay one XLA
        # transpose pass here; a transpose-free 3-D kernel variant could avoid it.
        xt = data if perm == tuple(range(data.ndim)) else jnp.transpose(data, perm)

        M = int(np.prod([data.shape[i] for i in keep], dtype=np.int64)) if keep else 1
        K = int(np.prod([data.shape[i] for i in dims], dtype=np.int64)) if dims else 1
        x2d = xt.reshape(M, K)

        out_dtype = (data.dtype if jnp.issubdtype(data.dtype, jnp.floating)
                     else jnp.float32)
        r = _l2_rows(x2d, out_dtype)  # (M,) ordered over kept axes

        if self.keepdim:
            out_shape = tuple(1 if i in dims else data.shape[i]
                              for i in range(data.ndim))
        else:
            out_shape = tuple(data.shape[i] for i in keep)
        return r.reshape(out_shape)


if __name__ == "__main__":
    key = jax.random.PRNGKey(0)
    k1, k2, k3 = jax.random.split(key, 3)
    x = jax.random.normal(k1, (2, 4, 16, 16), dtype=jnp.float32)

    # Case 1: opset < 13, reduce over spatial dims (NCHW -> N,C,1,1), keepdim.
    mod = ReduceL2(opset_version=11, dim=(2, 3), keepdim=True)
    out = jax.block_until_ready(mod(x))
    ref = jnp.sqrt(jnp.sum(jnp.square(x), axis=(2, 3), keepdims=True))
    np.testing.assert_allclose(np.asarray(out), np.asarray(ref),
                               rtol=1e-5, atol=1e-5)
    assert out.shape == (2, 4, 1, 1) and out.dtype == x.dtype

    # Case 2: opset >= 13, axes at call time, keepdim=False (masked K tail, K<128).
    mod2 = ReduceL2(opset_version=13, keepdim=False)
    out2 = jax.block_until_ready(mod2(x, axes=jnp.array([1])))
    ref2 = jnp.sqrt(jnp.sum(jnp.square(x), axis=1))
    np.testing.assert_allclose(np.asarray(out2), np.asarray(ref2),
                               rtol=1e-5, atol=1e-5)
    assert out2.shape == (2, 16, 16)

    # Case 3: full reduction (dims=None) -> small-M reshape fast path.
    mod3 = ReduceL2(opset_version=13, keepdim=True)
    out3 = jax.block_until_ready(mod3(x))
    ref3 = jnp.sqrt(jnp.sum(jnp.square(x), keepdims=True))
    np.testing.assert_allclose(np.asarray(out3), np.asarray(ref3),
                               rtol=1e-5, atol=1e-5)
    assert out3.shape == (1, 1, 1, 1)

    # Case 4: full reduction with K not divisible by 128 -> lane-partial
    # (parallel-K) small-M fallback kernel.
    x4 = jax.random.normal(k2, (1, 1100), dtype=jnp.float32)
    mod4 = ReduceL2(opset_version=13, keepdim=False)
    out4 = jax.block_until_ready(mod4(x4))
    ref4 = jnp.sqrt(jnp.sum(jnp.square(x4)))
    np.testing.assert_allclose(np.asarray(out4), np.asarray(ref4),
                               rtol=1e-5, atol=1e-5)
    assert out4.shape == ()

    # Case 5: bf16 input with a masked tail chunk (per-chunk cast path).
    x5 = jax.random.normal(k3, (16, 300), dtype=jnp.bfloat16)
    mod5 = ReduceL2(opset_version=11, dim=1, keepdim=False)
    out5 = jax.block_until_ready(mod5(x5))
    ref5 = jnp.sqrt(jnp.sum(jnp.square(x5.astype(jnp.float32)), axis=1))
    np.testing.assert_allclose(np.asarray(out5, dtype=np.float32),
                               np.asarray(ref5), rtol=2e-2, atol=2e-2)
    assert out5.shape == (16,) and out5.dtype == x5.dtype

    print("KERNEL_OK")
</pallas_src>

<mosaic_0001>
module attributes {stable_mosaic.version = 11 : i64} {
  func.func @_reduce_l2_kernel(%arg0: i32, %arg1: i32, %arg2: memref<8x256xf32, #tpu.memory_space<vmem>>, %arg3: memref<8x1xf32, #tpu.memory_space<vmem>>, %arg4: memref<8x128xf32, #tpu.memory_space<vmem>>) attributes {dimension_semantics = [#tpu.dimension_semantics<parallel>, #tpu.dimension_semantics<arbitrary>], iteration_bounds = array<i64: 1, 1>, scalar_prefetch = 0 : i64, scratch_operands = 1 : i64, tpu.core_type = #tpu.core_type<tc>, window_params = [{transform_indices = @transform_0, window_bounds = array<i64: 8, 256>}, {transform_indices = @transform_1, window_bounds = array<i64: 8, 1>}]} {
    %c0_i32 = arith.constant 0 : i32
    %0 = arith.cmpi eq, %arg1, %c0_i32 : i32
    %1 = arith.extui %0 : i1 to i32
    %c0_i32_0 = arith.constant 0 : i32
    %2 = arith.cmpi ne, %1, %c0_i32_0 : i32
    scf.if %2 {
      %cst = arith.constant 0.000000e+00 : f32
      %14 = vector.broadcast %cst : f32 to vector<8x128xf32>
      %c0_9 = arith.constant 0 : index
      %c0_10 = arith.constant 0 : index
      %15 = vector.load %arg4[%c0_9, %c0_10] : memref<8x128xf32, #tpu.memory_space<vmem>>, vector<8x128xf32>
      tpu.vector_store %arg4[%c0_9, %c0_10], %14 {strides = array<i32>} : memref<8x128xf32, #tpu.memory_space<vmem>>, vector<8x128xf32>,
    } else {
    }
    %c0 = arith.constant 0 : index
    %c0_1 = arith.constant 0 : index
    %3 = vector.load %arg4[%c0, %c0_1] : memref<8x128xf32, #tpu.memory_space<vmem>>, vector<8x128xf32>
    %c0_2 = arith.constant 0 : index
    %c0_3 = arith.constant 0 : index
    %4 = vector.load %arg2[%c0_2, %c0_3] : memref<8x256xf32, #tpu.memory_space<vmem>>, vector<8x128xf32>
    %5 = arith.mulf %4, %4 : vector<8x128xf32>
    %c0_4 = arith.constant 0 : index
    %c128 = arith.constant 128 : index
    %6 = vector.load %arg2[%c0_4, %c128] : memref<8x256xf32, #tpu.memory_space<vmem>>, vector<8x128xf32>
    %7 = arith.mulf %6, %6 : vector<8x128xf32>
    %8 = arith.addf %5, %7 : vector<8x128xf32>
    %9 = arith.addf %3, %8 : vector<8x128xf32>
    %c0_5 = arith.constant 0 : index
    %c0_6 = arith.constant 0 : index
    %10 = vector.load %arg4[%c0_5, %c0_6] : memref<8x128xf32, #tpu.memory_space<vmem>>, vector<8x128xf32>
    tpu.vector_store %arg4[%c0_5, %c0_6], %9 {strides = array<i32>} : memref<8x128xf32, #tpu.memory_space<vmem>>, vector<8x128xf32>,
    %c0_i32_7 = arith.constant 0 : i32
    %11 = arith.cmpi eq, %arg1, %c0_i32_7 : i32
    %12 = arith.extui %11 : i1 to i32
    %c0_i32_8 = arith.constant 0 : i32
    %13 = arith.cmpi ne, %12, %c0_i32_8 : i32
    scf.if %13 {
      %c0_9 = arith.constant 0 : index
      %c0_10 = arith.constant 0 : index
      %14 = vector.load %arg4[%c0_9, %c0_10] : memref<8x128xf32, #tpu.memory_space<vmem>>, vector<8x128xf32>
      %cst = arith.constant dense<0.000000e+00> : vector<8xf32>
      %15 = vector.multi_reduction <add>, %14, %cst [1] : vector<8x128xf32> to vector<8xf32>
      %16 = vector.shape_cast %15 : vector<8xf32> to vector<8x1xf32>
      %17 = math.sqrt %16 : vector<8x1xf32>
      %c0_11 = arith.constant 0 : index
      %c0_12 = arith.constant 0 : index
      %18 = vector.load %arg3[%c0_11, %c0_12] : memref<8x1xf32, #tpu.memory_space<vmem>>, vector<8x1xf32>
      tpu.vector_store %arg3[%c0_11, %c0_12], %17 {strides = array<i32>} : memref<8x1xf32, #tpu.memory_space<vmem>>, vector<8x1xf32>,
    } else {
    }
    return
  }
  func.func @transform_0(%arg0: i32, %arg1: i32) -> (i32, i32) {
    %c0_i32 = arith.constant 0 : i32
    return %arg0, %arg1 : i32, i32
  }
  func.func @transform_1(%arg0: i32, %arg1: i32) -> (i32, i32) {
    %c0_i32 = arith.constant 0 : i32
    %c0_i32_0 = arith.constant 0 : i32
    return %arg0, %c0_i32 : i32, i32
  }
}

</mosaic_0001>

<bundles_post_ra>
// kernel: tpu_custom_call.1
= control target key start
LH: loop header
LB: loop body
LE: loop exit
PB: predicated region body
PF: predicated region fallthrough
CT: control target
= control target key end

     0   :  { %6 = vsyncpa [#allocation4], 0  ;;  %s80_s6 = smov [#allocation3]   ;;  %s106_s0 = inlined_call_operand.hbm [shape: f32[8,256], index: 0, kind: input, shape index: {}]   ;;  %s107_s1 = inlined_call_operand.vmem [shape: f32[8,1], index: 1, kind: output, shape index: {}]  }
   0x1   :  { %s13_s7 = sshll.u32 %s80_s6, 4  ;;  %s56_s10 = scalar_lea.hbm %s106_s0, 256  ;;  %s14_s7 = int_to_ptr.vmem [resolvable:$true] %s13_s7 }
   0x2   :  { %p57_p0 = scmp.ne.s32.totalorder %s106_s0, %s56_s10  ;;  %p60_p1 = scmp.lt.u32.totalorder %s56_s10, %s106_s0 }
   0x4   :  { %p62_p2 = pnand %p60_p1, %p57_p0 }
   0x6   :  { %65 = shalt.err (!%p62_p2)
}
   0x7   :  { %s66_s15 = scalar_lea.vmem %s14_s7, 256  ;;  %p71_p4 = scmp.lt.s32.totalorder %s14_s7, %s14_s7 }
   0x8   :  { %p67_p3 = scmp.ne.s32.totalorder %s14_s7, %s66_s15  ;;  %p72_p5 = scmp.lt.s32.totalorder %s66_s15, %s66_s15 }
   0xa   :  { %p73_p6 = por %p72_p5, %p71_p4 }
   0xc   :  { %p74_p7 = pnand %p73_p6, %p67_p3 }
   0xe   :  { %77 = shalt.err (!%p74_p7)
}
   0xf   :  { %16 = dma.hbm_to_vmem [thread:$0]  %s106_s0, 256, %s14_s7, [#allocation4]  }
  0x10   :  { %78 = dma.done.wait [#allocation4], 256  }
  0x11   :  { %79 = vsyncadd [#allocation4], 4294967040  ;;  %v26_v0 = vld [vmem:[#allocation3] sm:$0xff]  ;;  %v28_v1 = vld [vmem:[#allocation3 + $0x8] sm:$0xff]  ;;  %vm46_vm1 = vcmask 7168  }
  0x12   :  { %v27_v2 = vmul.f32 %v26_v0, %v26_v0  ;;  %v29_v3 = vmul.f32 %v28_v1, %v28_v1 }
  0x14   :  { %v30_v4 = vadd.f32 %v29_v3, %v27_v2 }
  0x16   :  { %37 = vadd.xlane.f32.xlu0 %v30_v4 }
  0xa3   :  { %v38_v5 = vpop.xlane.xlu0 %37 }
  0xa4   :  { %54 = vrsqrt.f32 %v38_v5  ;;  %vm41_vm0 = vcmp.eq.f32.partialorder %v38_v5, inf  ;;  %v44_v8 = vand.u32 2147483648, %v38_v5  ;;  %vm43_vm2 = vcmp.eq.f32.partialorder %v38_v5, 0.0 }
  0xae   :  { %v55_v6 = vpop.eup %54 }
  0xaf   :  { %v40_v7 = vmul.f32 %v55_v6, %v38_v5 }
  0xb1   :  { %v42_v9 = vsel %vm41_vm0, %v38_v5, %v40_v7 }
  0xb2   :  { %v45_v10 = vsel %vm43_vm2, %v44_v8, %v42_v9 }
  0xb3   :  { %47 = vst.msk [vmem:[%s107_s1] sm:$0xff] %vm46_vm1, %v45_v10 }
  0xb4   :  { %52 = vsyncpa [#allocation4], 1 }

</bundles_post_ra>
